<compile_context>
chip_gen: v5e
topology: v5e:2x2
jax: 0.10.0
libtpu: 0.0.40
codegen_flags: <defaults>
</compile_context>

<pallas_src>
import functools

import jax
import jax.numpy as jnp
from jax.experimental import pallas as pl
from jax.experimental.pallas import tpu as pltpu

ALPHA = 0.25
GAMMA = 2.0

ROW_WIDTH = 1024        # lane axis: large multiple of 128 -> unmasked vst
SUBLANE = 8             # sublane-dense rows
MAX_TILE_ROWS = 512     # 512 x 1024 f32 = 2 MiB per input tile
                        # (2 inputs + 1 output) x double-buffer = 12 MiB VMEM,
                        # comfortably under v7x's 64 MiB (and the 32 MiB default).


def _round_up(n, m):
    return -(-n // m) * m


def _focal_loss_kernel(x_ref, t_ref, o_ref, *, alpha, gamma):
    x = x_ref[...].astype(jnp.float32)
    t = t_ref[...].astype(jnp.float32)

    # Shared transcendental: e = exp(-|x|) feeds both the stable BCE log term
    # and the sigmoid, so we pay one exp + one log per element (not 2x exp).
    e = jnp.exp(-jnp.abs(x))
    log1pe = jnp.log1p(e)

    # Numerically-stable BCE-with-logits (== nn.BCEWithLogitsLoss, 'none'):
    #   bce = max(x, 0) - x*t + log(1 + exp(-|x|))
    bce = jnp.maximum(x, 0.0) - x * t + log1pe

    # sigmoid(x) = 1/(1+e) if x >= 0 else e/(1+e)  (e = exp(-|x|))
    denom = 1.0 + e
    inv = pl.reciprocal(denom, approx=True)      # EUP slot, near-free
    inv = inv * (2.0 - denom * inv)              # one Newton step -> full f32 precision
    probs = jnp.where(x >= 0.0, inv, e * inv)

    # Single compare shared by both selects; exact t == 1 semantics to match
    # the PyTorch module (hard binary labels).
    is_pos = t == 1.0
    one_minus_pt = jnp.where(is_pos, 1.0 - probs, probs)
    alpha_t = jnp.where(is_pos, alpha, 1.0 - alpha)

    # pow with a float exponent lowers to exp(gamma*log(.)) -> 2 extra EUP ops
    # and a -inf intermediate at pt==1; use cheap VPU multiplies for integer gamma.
    g = float(gamma)
    if g == 2.0:
        focal_pow = one_minus_pt * one_minus_pt
    elif g == int(g) and g >= 0.0:
        focal_pow = jnp.ones_like(one_minus_pt)
        for _ in range(int(g)):
            focal_pow = focal_pow * one_minus_pt
    else:
        focal_pow = jnp.power(one_minus_pt, gamma)

    o_ref[...] = (alpha_t * focal_pow * bce).astype(o_ref.dtype)


def focal_loss(logits, targets, alpha=ALPHA, gamma=GAMMA):
    """Pallas TPU focal loss. logits, targets: (batch,). Returns (batch,) float32."""
    assert logits.shape == targets.shape
    (b,) = logits.shape

    # Lane/sublane-dense 2-D layout: (rows, 1024), rows a multiple of 8.
    n_rows = _round_up(_round_up(b, ROW_WIDTH) // ROW_WIDTH, SUBLANE)
    if n_rows > MAX_TILE_ROWS:
        n_rows = _round_up(n_rows, MAX_TILE_ROWS)
        tile_rows = MAX_TILE_ROWS
    else:
        tile_rows = n_rows
    padded = n_rows * ROW_WIDTH
    pad = padded - b

    x = jnp.pad(logits, (0, pad)) if pad else logits
    t = jnp.pad(targets, (0, pad)) if pad else targets
    x2 = x.reshape(n_rows, ROW_WIDTH)
    t2 = t.reshape(n_rows, ROW_WIDTH)

    kernel = functools.partial(_focal_loss_kernel, alpha=alpha, gamma=gamma)

    out = pl.pallas_call(
        kernel,
        out_shape=jax.ShapeDtypeStruct((n_rows, ROW_WIDTH), jnp.float32),
        grid=(n_rows // tile_rows,),
        in_specs=[
            pl.BlockSpec((tile_rows, ROW_WIDTH), lambda i: (i, 0)),
            pl.BlockSpec((tile_rows, ROW_WIDTH), lambda i: (i, 0)),
        ],
        out_specs=pl.BlockSpec((tile_rows, ROW_WIDTH), lambda i: (i, 0)),
        compiler_params=pltpu.CompilerParams(
            # Row tiles are independent -> shard across the 2 TCs on v7x;
            # harmless (single TC) on v5e/v6e.
            dimension_semantics=("parallel",),
        ),
    )(x2, t2)

    return out.reshape(padded)[:b]


def _focal_loss_ref(logits, targets, alpha=ALPHA, gamma=GAMMA):
    """Pure-JAX reference mirroring the PyTorch module."""
    x = logits.astype(jnp.float32)
    t = targets.astype(jnp.float32)
    bce = jnp.maximum(x, 0.0) - x * t + jnp.log1p(jnp.exp(-jnp.abs(x)))
    probs = jax.nn.sigmoid(x)
    pt = jnp.where(t == 1.0, probs, 1.0 - probs)
    alpha_t = jnp.where(t == 1.0, alpha, 1.0 - alpha)
    return alpha_t * jnp.power(1.0 - pt, gamma) * bce


if __name__ == "__main__":
    key = jax.random.PRNGKey(0)
    k1, k2 = jax.random.split(key)

    batch = 8
    logits = jax.random.normal(k1, (batch,), dtype=jnp.float32) * 2.0
    targets = (jax.random.uniform(k2, (batch,)) > 0.5).astype(jnp.float32)

    out = focal_loss(logits, targets)
    out = jax.block_until_ready(out)

    ref = _focal_loss_ref(logits, targets)
    assert out.shape == (batch,)
    assert jnp.allclose(out, ref, atol=1e-5, rtol=1e-4), (out, ref)

    print("KERNEL_OK")
</pallas_src>

<mosaic_0001>
module attributes {stable_mosaic.version = 11 : i64} {
  func.func @_focal_loss_kernel(%arg0: i32, %arg1: memref<8x1024xf32, #tpu.memory_space<vmem>>, %arg2: memref<8x1024xf32, #tpu.memory_space<vmem>>, %arg3: memref<8x1024xf32, #tpu.memory_space<vmem>>) attributes {dimension_semantics = [#tpu.dimension_semantics<parallel>], iteration_bounds = array<i64: 1>, scalar_prefetch = 0 : i64, scratch_operands = 0 : i64, tpu.core_type = #tpu.core_type<tc>, window_params = [{transform_indices = @transform_0, window_bounds = array<i64: 8, 1024>}, {transform_indices = @transform_1, window_bounds = array<i64: 8, 1024>}, {transform_indices = @transform_2, window_bounds = array<i64: 8, 1024>}]} {
    %c0 = arith.constant 0 : index
    %c0_0 = arith.constant 0 : index
    %0 = vector.load %arg1[%c0, %c0_0] : memref<8x1024xf32, #tpu.memory_space<vmem>>, vector<8x1024xf32>
    %c0_1 = arith.constant 0 : index
    %c0_2 = arith.constant 0 : index
    %1 = vector.load %arg2[%c0_1, %c0_2] : memref<8x1024xf32, #tpu.memory_space<vmem>>, vector<8x1024xf32>
    %2 = math.absf %0 : vector<8x1024xf32>
    %cst = arith.constant 0.000000e+00 : f32
    %3 = vector.broadcast %cst : f32 to vector<8x1024xf32>
    %4 = arith.subf %3, %2 : vector<8x1024xf32>
    %5 = math.exp %4 : vector<8x1024xf32>
    %6 = math.log1p %5 : vector<8x1024xf32>
    %cst_3 = arith.constant 0.000000e+00 : f32
    %7 = vector.broadcast %cst_3 : f32 to vector<8x1024xf32>
    %8 = arith.maximumf %0, %7 : vector<8x1024xf32>
    %9 = arith.mulf %0, %1 : vector<8x1024xf32>
    %10 = arith.subf %8, %9 : vector<8x1024xf32>
    %11 = arith.addf %10, %6 : vector<8x1024xf32>
    %cst_4 = arith.constant 1.000000e+00 : f32
    %12 = vector.broadcast %cst_4 : f32 to vector<8x1024xf32>
    %13 = arith.addf %12, %5 : vector<8x1024xf32>
    %14 = tpu.reciprocal %13 {approx = true} : vector<8x1024xf32> -> vector<8x1024xf32>
    %15 = arith.mulf %13, %14 : vector<8x1024xf32>
    %cst_5 = arith.constant 2.000000e+00 : f32
    %16 = vector.broadcast %cst_5 : f32 to vector<8x1024xf32>
    %17 = arith.subf %16, %15 : vector<8x1024xf32>
    %18 = arith.mulf %14, %17 : vector<8x1024xf32>
    %cst_6 = arith.constant 0.000000e+00 : f32
    %19 = vector.broadcast %cst_6 : f32 to vector<8x1024xf32>
    %20 = arith.cmpf oge, %0, %19 : vector<8x1024xf32>
    %21 = arith.mulf %5, %18 : vector<8x1024xf32>
    %22 = arith.select %20, %18, %21 : vector<8x1024xi1>, vector<8x1024xf32>
    %cst_7 = arith.constant 1.000000e+00 : f32
    %23 = vector.broadcast %cst_7 : f32 to vector<8x1024xf32>
    %24 = arith.cmpf oeq, %1, %23 : vector<8x1024xf32>
    %cst_8 = arith.constant 1.000000e+00 : f32
    %25 = vector.broadcast %cst_8 : f32 to vector<8x1024xf32>
    %26 = arith.subf %25, %22 : vector<8x1024xf32>
    %27 = arith.select %24, %26, %22 : vector<8x1024xi1>, vector<8x1024xf32>
    %cst_9 = arith.constant 2.500000e-01 : f32
    %cst_10 = arith.constant 7.500000e-01 : f32
    %28 = vector.broadcast %cst_9 : f32 to vector<8x1024xf32>
    %29 = vector.broadcast %cst_10 : f32 to vector<8x1024xf32>
    %30 = arith.select %24, %28, %29 : vector<8x1024xi1>, vector<8x1024xf32>
    %31 = arith.mulf %27, %27 : vector<8x1024xf32>
    %32 = arith.mulf %30, %31 : vector<8x1024xf32>
    %33 = arith.mulf %32, %11 : vector<8x1024xf32>
    %c0_11 = arith.constant 0 : index
    %c0_12 = arith.constant 0 : index
    %34 = vector.load %arg3[%c0_11, %c0_12] : memref<8x1024xf32, #tpu.memory_space<vmem>>, vector<8x1024xf32>
    tpu.vector_store %arg3[%c0_11, %c0_12], %33 {strides = array<i32>} : memref<8x1024xf32, #tpu.memory_space<vmem>>, vector<8x1024xf32>,
    return
  }
  func.func @transform_0(%arg0: i32) -> (i32, i32) {
    %c0_i32 = arith.constant 0 : i32
    %c0_i32_0 = arith.constant 0 : i32
    return %arg0, %c0_i32 : i32, i32
  }
  func.func @transform_1(%arg0: i32) -> (i32, i32) {
    %c0_i32 = arith.constant 0 : i32
    %c0_i32_0 = arith.constant 0 : i32
    return %arg0, %c0_i32 : i32, i32
  }
  func.func @transform_2(%arg0: i32) -> (i32, i32) {
    %c0_i32 = arith.constant 0 : i32
    %c0_i32_0 = arith.constant 0 : i32
    return %arg0, %c0_i32 : i32, i32
  }
}

</mosaic_0001>

<bundles_post_ra>
// kernel: tpu_custom_call.1
= control target key start
LH: loop header
LB: loop body
LE: loop exit
PB: predicated region body
PF: predicated region fallthrough
CT: control target
= control target key end

     0   :  { %7 = vsyncpa [#allocation3], 0  ;;  %s707_s0 = inlined_call_operand.hbm [shape: f32[8,1024], index: 0, kind: input, shape index: {}]   ;;  %s708_s1 = inlined_call_operand.hbm [shape: f32[8,1024], index: 1, kind: input, shape index: {}]   ;;  %s709_s2 = inlined_call_operand.hbm [shape: f32[8,1024], index: 2, kind: output, shape index: {}]  }
   0x1   :  { %8 = vsyncpa [#allocation6], 0 }
   0x2   :  { %9 = vsyncpa [#allocation4], 0  ;;  %s15_s11 = sshll.u32 %s707_s0, 4  ;;  %s468_s12 = smov [#allocation2]   ;;  %s16_s11 = int_to_ptr.hbm [resolvable:$true] %s15_s11 }
   0x3   :  { %s17_s13 = sshll.u32 %s468_s12, 4  ;;  %s26_s16 = sshll.u32 %s708_s1, 4  ;;  %s18_s13 = int_to_ptr.vmem [resolvable:$true] %s17_s13  ;;  %s27_s16 = int_to_ptr.hbm [resolvable:$true] %s26_s16 }
   0x4   :  { %20 = dma.hbm_to_vmem [thread:$0]  %s16_s11, 1024, %s18_s13, [#allocation3]  }
   0x5   :  { %s469_s17 = smov [#allocation5]  }
   0x6   :  { %s28_s18 = sshll.u32 %s469_s17, 4  ;;  %s29_s18 = int_to_ptr.vmem [resolvable:$true] %s28_s18 }
   0x7   :  { %31 = dma.hbm_to_vmem [thread:$0]  %s27_s16, 1024, %s29_s18, [#allocation6]  }
   0x8   :  { %462 = dma.done.wait [#allocation3], 1024  }
   0x9   :  { %463 = vsyncadd [#allocation3], 4294966272 }
   0xa   :  { %464 = dma.done.wait [#allocation6], 1024  }
   0xb   :  { %465 = vsyncadd [#allocation6], 4294966272  ;;  %v493_v0 = vld [vmem:[#allocation2] sm:$0xff]  ;;  %v495_v1 = vld [vmem:[#allocation2 + $0x8] sm:$0xff]  ;;  %v470_v32 = vmov 0.75   ;;  %s471_s0 = smov [#allocation7]  }
   0xc   :  { %v56_v2 = vand.u32 2147483647, %v493_v0  ;;  %v57_v3 = vand.u32 2147483647, %v495_v1  ;;  %v499_v4 = vld [vmem:[#allocation2 + $0x10] sm:$0xff]  ;;  %v501_v6 = vld [vmem:[#allocation2 + $0x18] sm:$0xff] }
   0xd   :  { %v58_v9 = vand.u32 2147483647, %v499_v4  ;;  %v59_v11 = vand.u32 2147483647, %v501_v6  ;;  %v505_v12 = vld [vmem:[#allocation5] sm:$0xff]  ;;  %v507_v14 = vld [vmem:[#allocation5 + $0x8] sm:$0xff] }
   0xe   :  { %v64_v5 = vsub.f32 0.0, %v56_v2  ;;  %v65_v7 = vsub.f32 0.0, %v57_v3  ;;  %v509_v17 = vld [vmem:[#allocation2 + $0x20] sm:$0xff]  ;;  %v160_v18 = vmax.f32 %v493_v0, 0.0  ;;  %v168_v19 = vmul.f32 %v505_v12, %v493_v0  ;;  %v514_v20 = vld [vmem:[#allocation5 + $0x10] sm:$0xff]  ;;  %v520_v25 = vld [vmem:[#allocation2 + $0x28] sm:$0xff] }
   0xf   :  { %v66_v13 = vsub.f32 0.0, %v58_v9  ;;  %v67_v15 = vsub.f32 0.0, %v59_v11  ;;  %v161_v22 = vmax.f32 %v495_v1, 0.0  ;;  %v169_v23 = vmul.f32 %v507_v14, %v495_v1  ;;  %v542_v36 = vld [vmem:[#allocation5 + $0x18] sm:$0xff]  ;;  %v565_v51 = vld [vmem:[#allocation2 + $0x30] sm:$0xff]  ;;  %s325_s1 = sshll.u32 %s471_s0, 4  ;;  %s326_s1 = int_to_ptr.vmem [resolvable:$true] %s325_s1 }
  0x10   :  { %v72_v8 = vmul.f32 1.442695, %v64_v5  ;;  %v74_v10 = vmul.f32 1.442695, %v65_v7  ;;  %v60_v24 = vand.u32 2147483647, %v509_v17  ;;  %v170_v28 = vmul.f32 %v514_v20, %v499_v4 }
  0x11   :  { %v76_v16 = vmul.f32 1.442695, %v66_v13  ;;  %v78_v21 = vmul.f32 1.442695, %v67_v15  ;;  %vm256_vm0 = vcmp.eq.f32.partialorder %v505_v12, 1.0  ;;  %v162_v27 = vmax.f32 %v499_v4, 0.0 }
  0x12   :  { %342 = vpow2.f32 %v72_v8  ;;  %v531_v31 = vsub.f32 %v160_v18, %v168_v19  ;;  %v536_v33 = vsel %vm256_vm0, 0.25, %v470_v32  ;;  %v539_v35 = vsub.f32 %v161_v22, %v169_v23  ;;  %v567_v52 = vld [vmem:[#allocation2 + $0x38] sm:$0xff]  ;;  %s327_s21 = sshll.u32 %s709_s2, 4  ;;  %s328_s21 = int_to_ptr.hbm [resolvable:$true] %s327_s21 }
  0x13   :  { %344 = vpow2.f32 %v74_v10  ;;  %vm257_vm1 = vcmp.eq.f32.partialorder %v507_v14, 1.0  ;;  %v61_v37 = vand.u32 2147483647, %v520_v25  ;;  %vm258_vm2 = vcmp.eq.f32.partialorder %v514_v20, 1.0 }
  0x14   :  { %346 = vpow2.f32 %v76_v16  ;;  %v68_v39 = vsub.f32 0.0, %v60_v24  ;;  %v553_v42 = vsel %vm257_vm1, 0.25, %v470_v32  ;;  %v555_v43 = vsub.f32 %v162_v27, %v170_v28 }
  0x15   :  { %348 = vpow2.f32 %v78_v21  ;;  %v163_v46 = vmax.f32 %v501_v6, 0.0  ;;  %v171_v47 = vmul.f32 %v542_v36, %v501_v6  ;;  %v69_v50 = vsub.f32 0.0, %v61_v37 }
  0x16   :  { %v572_v54 = vsel %vm258_vm2, 0.25, %v470_v32  ;;  %v80_v55 = vmul.f32 1.442695, %v68_v39  ;;  %vm232_vm3 = vcmp.ge.f32.partialorder %v493_v0, 0.0  ;;  %vm259_vm4 = vcmp.eq.f32.partialorder %v542_v36, 1.0 }
  0x17   :  { %v578_v60 = vsub.f32 %v163_v46, %v171_v47  ;;  %v62_v61 = vand.u32 2147483647, %v565_v51  ;;  %v63_v62 = vand.u32 2147483647, %v567_v52  ;;  %vm233_vm6 = vcmp.ge.f32.partialorder %v495_v1, 0.0 }
  0x18   :  { %v522_v26 = vpop.eup %342  ;;  %v590_v3 = vsel %vm259_vm4, 0.25, %v470_v32  ;;  %v82_v5 = vmul.f32 1.442695, %v69_v50  ;;  %vm234_vm7 = vcmp.ge.f32.partialorder %v499_v4, 0.0  ;;  %vm235_vm9 = vcmp.ge.f32.partialorder %v501_v6, 0.0 }
  0x19   :  { %v528_v29 = vpop.eup %344  ;;  %v88_v30 = vadd.f32 1.0, %v522_v26  ;;  %v91_v38 = vmul.f32 -0.5, %v522_v26  ;;  %v94_v48 = vand.u32 2147483647, %v522_v26  ;;  %v608_v50 = vsub.f32 0.0, %v63_v62 }
  0x1a   :  { %v97_v34 = vadd.f32 1.0, %v528_v29  ;;  %v547_v40 = vpop.eup %346  ;;  %v100_v41 = vmul.f32 -0.5, %v528_v29  ;;  %v103_v59 = vand.u32 2147483647, %v528_v29  ;;  %vm236_vm12 = vcmp.ge.f32.partialorder %v509_v17, 0.0 }
  0x1b   :  { %350 = vlog2.f32 %v88_v30  ;;  %v557_v44 = vpop.eup %348  ;;  %v106_v45 = vadd.f32 1.0, %v547_v40  ;;  %v92_v53 = vadd.f32 1.0, %v91_v38  ;;  %v109_v57 = vmul.f32 -0.5, %v547_v40 }
  0x1c   :  { %352 = vrcp.f32 %v88_v30  ;;  %v115_v49 = vadd.f32 1.0, %v557_v44  ;;  %v101_v56 = vadd.f32 1.0, %v100_v41  ;;  %vm582_vm5 = vcmp.lt.f32.partialorder %v94_v48, 0.0004427343 }
  0x1d   :  { %354 = vlog2.f32 %v97_v34  ;;  %v93_v8 = vmul.f32 %v522_v26, %v92_v53  ;;  %v118_v10 = vmul.f32 -0.5, %v557_v44  ;;  %v110_v18 = vadd.f32 1.0, %v109_v57 }
  0x1e   :  { %356 = vrcp.f32 %v97_v34  ;;  %v102_v16 = vmul.f32 %v528_v29, %v101_v56  ;;  %vm596_vm8 = vcmp.lt.f32.partialorder %v103_v59, 0.0004427343  ;;  %v112_v27 = vand.u32 2147483647, %v547_v40 }
  0x1f   :  { %358 = vlog2.f32 %v106_v45  ;;  %v121_v28 = vand.u32 2147483647, %v557_v44  ;;  %v119_v41 = vadd.f32 1.0, %v118_v10  ;;  %v111_v48 = vmul.f32 %v547_v40, %v110_v18 }
  0x20   :  { %360 = vrcp.f32 %v106_v45  ;;  %vm613_vm10 = vcmp.lt.f32.partialorder %v112_v27, 0.0004427343 }
  0x21   :  { %v351_v58 = vpop.eup %350  ;;  %362 = vrcp.f32 %v115_v49  ;;  %vm617_vm11 = vcmp.lt.f32.partialorder %v121_v28, 0.0004427343 }
  0x22   :  { %v353_v63 = vpop.eup %352  ;;  %364 = vpow2.f32 %v80_v55  ;;  %v90_v13 = vmul.f32 0.6931472, %v351_v58  ;;  %v164_v58 = vmax.f32 %v509_v17, 0.0 }
  0x23   :  { %v355_v7 = vpop.eup %354  ;;  %v208_v9 = vmul.f32 %v353_v63, %v88_v30  ;;  %366 = vlog2.f32 %v115_v49  ;;  %v70_v30 = vsub.f32 0.0, %v62_v61 }
  0x24   :  { %v357_v11 = vpop.eup %356  ;;  %v99_v15 = vmul.f32 0.6931472, %v355_v7  ;;  %368 = vpow2.f32 %v82_v5  ;;  %v96_v47 = vsel %vm582_vm5, %v93_v8, %v90_v13  ;;  %v120_v7 = vmul.f32 %v557_v44, %v119_v41 }
  0x25   :  { %v359_v19 = vpop.eup %358  ;;  %v216_v21 = vsub.f32 2.0, %v208_v9  ;;  %v209_v23 = vmul.f32 %v357_v11, %v97_v34  ;;  %v184_v9 = vadd.f32 %v531_v31, %v96_v47  ;;  %v84_v28 = vmul.f32 1.442695, %v70_v30 }
  0x26   :  { %v361_v24 = vpop.eup %360  ;;  %v105_v34 = vsel %vm596_vm8, %v102_v16, %v99_v15  ;;  %vm239_vm5 = vcmp.ge.f32.partialorder %v567_v52, 0.0 }
  0x27   :  { %v224_v37 = vmul.f32 %v353_v63, %v216_v21  ;;  %v217_v38 = vsub.f32 2.0, %v209_v23  ;;  %v210_v39 = vmul.f32 %v361_v24, %v106_v45  ;;  %v363_v46 = vpop.eup %362  ;;  %v108_v45 = vmul.f32 0.6931472, %v359_v19 }
  0x28   :  { %v610_v53 = vpop.eup %364  ;;  %v211_v61 = vmul.f32 %v363_v46, %v115_v49 }
  0x29   :  { %v240_v55 = vmul.f32 %v522_v26, %v224_v37  ;;  %v225_v56 = vmul.f32 %v357_v11, %v217_v38  ;;  %v218_v57 = vsub.f32 2.0, %v210_v39  ;;  %v124_v63 = vadd.f32 1.0, %v610_v53  ;;  %v367_v62 = vpop.eup %366 }
  0x2a   :  { %v626_v8 = vpop.eup %368  ;;  %v185_v11 = vadd.f32 %v539_v35, %v105_v34  ;;  %v219_v13 = vsub.f32 2.0, %v211_v61  ;;  %v114_v0 = vsel %vm613_vm10, %v111_v48, %v108_v45  ;;  %v117_v18 = vmul.f32 0.6931472, %v367_v62 }
  0x2b   :  { %v248_v2 = vsel %vm232_vm3, %v224_v37, %v240_v55  ;;  %v241_v26 = vmul.f32 %v528_v29, %v225_v56  ;;  %v226_v5 = vmul.f32 %v361_v24, %v218_v57  ;;  %370 = vrcp.f32 %v124_v63 }
  0x2c   :  { %v264_v10 = vsub.f32 1.0, %v248_v2  ;;  %v227_v19 = vmul.f32 %v363_v46, %v219_v13  ;;  %v127_v21 = vmul.f32 -0.5, %v610_v53  ;;  %v133_v1 = vadd.f32 1.0, %v626_v8  ;;  %v52_v46 = vld [vmem:[#allocation5 + $0x20] sm:$0xff] }
  0x2d   :  { %v249_v49 = vsel %vm233_vm6, %v225_v56, %v241_v26  ;;  %v242_v15 = vmul.f32 %v547_v40, %v226_v5  ;;  %372 = vlog2.f32 %v124_v63  ;;  %v186_v27 = vadd.f32 %v555_v43, %v114_v0 }
  0x2e   :  { %v272_v29 = vsel %vm256_vm0, %v264_v10, %v248_v2  ;;  %v265_v16 = vsub.f32 1.0, %v249_v49  ;;  %v243_v40 = vmul.f32 %v557_v44, %v227_v19  ;;  %v123_v37 = vsel %vm617_vm11, %v120_v7, %v117_v18  ;;  %v53_v2 = vld [vmem:[#allocation5 + $0x28] sm:$0xff] }
  0x2f   :  { %v288_v31 = vmul.f32 %v272_v29, %v272_v29  ;;  %v250_v35 = vsel %vm234_vm7, %v226_v5, %v242_v15  ;;  %374 = vrcp.f32 %v133_v1  ;;  %v128_v47 = vadd.f32 1.0, %v127_v21 }
  0x30   :  { %v273_v22 = vsel %vm257_vm1, %v265_v16, %v249_v49  ;;  %v266_v23 = vsub.f32 1.0, %v250_v35  ;;  %v251_v14 = vsel %vm235_vm9, %v227_v19, %v243_v40  ;;  %376 = vlog2.f32 %v133_v1 }
  0x31   :  { %v296_v12 = vmul.f32 %v288_v31, %v536_v33  ;;  %v289_v24 = vmul.f32 %v273_v22, %v273_v22  ;;  %v371_v38 = vpop.eup %370  ;;  %v267_v33 = vsub.f32 1.0, %v251_v14  ;;  %v136_v20 = vmul.f32 -0.5, %v626_v8 }
  0x32   :  { %v274_v4 = vsel %vm258_vm2, %v266_v23, %v250_v35  ;;  %v212_v43 = vmul.f32 %v371_v38, %v124_v63  ;;  %378 = vpow2.f32 %v84_v28  ;;  %v187_v55 = vadd.f32 %v578_v60, %v123_v37 }
  0x33   :  { %v304_v39 = vmul.f32 %v296_v12, %v184_v9  ;;  %v297_v44 = vmul.f32 %v289_v24, %v553_v42  ;;  %v290_v41 = vmul.f32 %v274_v4, %v274_v4  ;;  %v275_v6 = vsel %vm259_vm4, %v267_v33, %v251_v14  ;;  %v373_v48 = vpop.eup %372 }
  0x34   :  { %v291_v42 = vmul.f32 %v275_v6, %v275_v6  ;;  %v130_v56 = vand.u32 2147483647, %v610_v53  ;;  %v220_v45 = vsub.f32 2.0, %v212_v43  ;;  %v172_v59 = vmul.f32 %v52_v46, %v509_v17  ;;  %v54_v43 = vld [vmem:[#allocation5 + $0x30] sm:$0xff] }
  0x35   :  { %312 = vst [vmem:[#allocation7] sm:$0xff] %v304_v39  ;;  %v305_v30 = vmul.f32 %v297_v44, %v185_v11  ;;  %v298_v34 = vmul.f32 %v290_v41, %v572_v54  ;;  %v375_v54 = vpop.eup %374  ;;  %vm260_vm13 = vcmp.eq.f32.partialorder %v52_v46, 1.0  ;;  %v137_v63 = vadd.f32 1.0, %v136_v20 }
  0x36   :  { %v299_v36 = vmul.f32 %v291_v42, %v590_v3  ;;  %v228_v61 = vmul.f32 %v371_v38, %v220_v45  ;;  %v126_v60 = vmul.f32 0.6931472, %v373_v48  ;;  %v129_v62 = vmul.f32 %v610_v53, %v128_v47  ;;  %v377_v7 = vpop.eup %376 }
  0x37   :  { %313 = vst [vmem:[#allocation7 + $0x8] sm:$0xff] %v305_v30  ;;  %v306_v57 = vmul.f32 %v298_v34, %v186_v27  ;;  %v213_v26 = vmul.f32 %v375_v54, %v133_v1  ;;  %v86_v5 = vmul.f32 1.442695, %v608_v50  ;;  %vm665_vm14 = vcmp.lt.f32.partialorder %v130_v56, 0.0004427343 }
  0x38   :  { %v307_v9 = vmul.f32 %v299_v36, %v187_v55  ;;  %v244_v11 = vmul.f32 %v610_v53, %v228_v61  ;;  %v139_v3 = vand.u32 2147483647, %v626_v8  ;;  %v379_v13 = vpop.eup %378  ;;  %v180_v49 = vsub.f32 %v164_v58, %v172_v59 }
  0x39   :  { %314 = vst [vmem:[#allocation7 + $0x10] sm:$0xff] %v306_v57  ;;  %v165_v0 = vmax.f32 %v520_v25, 0.0  ;;  %v221_v15 = vsub.f32 2.0, %v213_v26  ;;  %380 = vpow2.f32 %v86_v5  ;;  %v138_v29 = vmul.f32 %v626_v8, %v137_v63  ;;  %v55_v63 = vld [vmem:[#allocation5 + $0x38] sm:$0xff] }
  0x3a   :  { %315 = vst [vmem:[#allocation7 + $0x18] sm:$0xff] %v307_v9  ;;  %v252_v50 = vsel %vm236_vm12, %v228_v61, %v244_v11  ;;  %v173_v16 = vmul.f32 %v53_v2, %v520_v25  ;;  %v142_v18 = vadd.f32 1.0, %v379_v13  ;;  %v132_v53 = vsel %vm665_vm14, %v129_v62, %v126_v60 }
  0x3b   :  { %v268_v19 = vsub.f32 1.0, %v252_v50  ;;  %v135_v31 = vmul.f32 0.6931472, %v377_v7  ;;  %v229_v35 = vmul.f32 %v375_v54, %v221_v15  ;;  %vm678_vm15 = vcmp.lt.f32.partialorder %v139_v3, 0.0004427343 }
  0x3c   :  { %vm237_vm0 = vcmp.ge.f32.partialorder %v520_v25, 0.0  ;;  %v284_v1 = vsel %vm260_vm13, 0.25, %v470_v32  ;;  %382 = vrcp.f32 %v142_v18  ;;  %v188_v23 = vadd.f32 %v180_v49, %v132_v53 }
  0x3d   :  { %v276_v17 = vsel %vm260_vm13, %v268_v19, %v252_v50  ;;  %v245_v22 = vmul.f32 %v626_v8, %v229_v35  ;;  %v141_v24 = vsel %vm678_vm15, %v138_v29, %v135_v31  ;;  %v181_v27 = vsub.f32 %v165_v0, %v173_v16 }
  0x3e   :  { %v292_v40 = vmul.f32 %v276_v17, %v276_v17  ;;  %vm261_vm1 = vcmp.eq.f32.partialorder %v53_v2, 1.0  ;;  %384 = vlog2.f32 %v142_v18  ;;  %v145_v14 = vmul.f32 -0.5, %v379_v13 }
  0x3f   :  { %v381_v12 = vpop.eup %380  ;;  %v253_v28 = vsel %vm237_vm0, %v229_v35, %v245_v22  ;;  %v285_v44 = vsel %vm261_vm1, 0.25, %v470_v32  ;;  %v189_v41 = vadd.f32 %v181_v27, %v141_v24  ;;  %v148_v34 = vand.u32 2147483647, %v379_v13 }
  0x40   :  { %v300_v4 = vmul.f32 %v292_v40, %v284_v1  ;;  %v269_v37 = vsub.f32 1.0, %v253_v28  ;;  %v151_v25 = vadd.f32 1.0, %v381_v12  ;;  %v146_v20 = vadd.f32 1.0, %v145_v14 }
  0x41   :  { %v154_v55 = vmul.f32 -0.5, %v381_v12  ;;  %v166_v42 = vmax.f32 %v565_v51, 0.0  ;;  %v174_v56 = vmul.f32 %v54_v43, %v565_v51  ;;  %vm238_vm2 = vcmp.ge.f32.partialorder %v565_v51, 0.0 }
  0x42   :  { %v308_v38 = vmul.f32 %v300_v4, %v188_v23  ;;  %v277_v39 = vsel %vm261_vm1, %v269_v37, %v253_v28  ;;  %v383_v8 = vpop.eup %382  ;;  %386 = vrcp.f32 %v151_v25  ;;  %v147_v59 = vmul.f32 %v379_v13, %v146_v20 }
  0x43   :  { %v293_v33 = vmul.f32 %v277_v39, %v277_v39  ;;  %v214_v46 = vmul.f32 %v383_v8, %v142_v18  ;;  %388 = vlog2.f32 %v151_v25  ;;  %vm693_vm3 = vcmp.lt.f32.partialorder %v148_v34, 0.0004427343 }
  0x44   :  { %316 = vst [vmem:[#allocation7 + $0x20] sm:$0xff] %v308_v38  ;;  %v385_v30 = vpop.eup %384  ;;  %vm262_vm4 = vcmp.eq.f32.partialorder %v54_v43, 1.0  ;;  %v155_v60 = vadd.f32 1.0, %v154_v55  ;;  %v182_v2 = vsub.f32 %v166_v42, %v174_v56  ;;  %v157_v5 = vand.u32 2147483647, %v381_v12 }
  0x45   :  { %v301_v47 = vmul.f32 %v293_v33, %v285_v44  ;;  %v222_v6 = vsub.f32 2.0, %v214_v46  ;;  %v144_v58 = vmul.f32 0.6931472, %v385_v30  ;;  %v286_v51 = vsel %vm262_vm4, 0.25, %v470_v32 }
  0x46   :  { %v167_v11 = vmax.f32 %v567_v52, 0.0  ;;  %v175_v3 = vmul.f32 %v55_v63, %v567_v52  ;;  %v156_v15 = vmul.f32 %v381_v12, %v155_v60  ;;  %vm158_vm6 = vcmp.lt.f32.partialorder %v157_v5, 0.0004427343 }
  0x47   :  { %v309_v48 = vmul.f32 %v301_v47, %v189_v41  ;;  %v230_v45 = vmul.f32 %v383_v8, %v222_v6  ;;  %v150_v9 = vsel %vm693_vm3, %v147_v59, %v144_v58  ;;  %vm263_vm7 = vcmp.eq.f32.partialorder %v55_v63, 1.0 }
  0x48   :  { %v387_v57 = vpop.eup %386  ;;  %v190_v50 = vadd.f32 %v182_v2, %v150_v9  ;;  %v183_v53 = vsub.f32 %v167_v11, %v175_v3  ;;  %v287_v1 = vsel %vm263_vm7, 0.25, %v470_v32 }
  0x49   :  { %317 = vst [vmem:[#allocation7 + $0x28] sm:$0xff] %v309_v48  ;;  %v246_v36 = vmul.f32 %v379_v13, %v230_v45  ;;  %v215_v61 = vmul.f32 %v387_v57, %v151_v25  ;;  %v389_v62 = vpop.eup %388 }
  0x4a   :  { %v153_v0 = vmul.f32 0.6931472, %v389_v62 }
  0x4b   :  { %v254_v26 = vsel %vm238_vm2, %v230_v45, %v246_v36  ;;  %v223_v7 = vsub.f32 2.0, %v215_v61 }
  0x4c   :  { %v270_v10 = vsub.f32 1.0, %v254_v26  ;;  %v159_v31 = vsel %vm158_vm6, %v156_v15, %v153_v0 }
  0x4d   :  { %v231_v13 = vmul.f32 %v387_v57, %v223_v7  ;;  %v191_v22 = vadd.f32 %v183_v53, %v159_v31 }
  0x4e   :  { %v278_v49 = vsel %vm262_vm4, %v270_v10, %v254_v26 }
  0x4f   :  { %v294_v29 = vmul.f32 %v278_v49, %v278_v49  ;;  %v247_v16 = vmul.f32 %v381_v12, %v231_v13 }
  0x51   :  { %v302_v18 = vmul.f32 %v294_v29, %v286_v51  ;;  %v255_v19 = vsel %vm239_vm5, %v231_v13, %v247_v16 }
  0x52   :  { %v271_v35 = vsub.f32 1.0, %v255_v19 }
  0x53   :  { %v310_v21 = vmul.f32 %v302_v18, %v190_v50 }
  0x54   :  { %v279_v17 = vsel %vm263_vm7, %v271_v35, %v255_v19 }
  0x55   :  { %318 = vst [vmem:[#allocation7 + $0x30] sm:$0xff] %v310_v21  ;;  %v295_v23 = vmul.f32 %v279_v17, %v279_v17 }
  0x57   :  { %v303_v52 = vmul.f32 %v295_v23, %v287_v1 }
  0x59   :  { %v311_v40 = vmul.f32 %v303_v52, %v191_v22 }
  0x5b   :  { %319 = vst [vmem:[#allocation7 + $0x38] sm:$0xff] %v311_v40 }
  0x5c   :  { %330 = dma.vmem_to_hbm [thread:$0]  %s326_s1, 1024, %s328_s21, [#allocation4]  }
  0x5d   :  { %466 = dma.done.wait [#allocation4], 1024  }
  0x5e   :  { %467 = vsyncadd [#allocation4], 4294966272 }
  0x5f   :  { %335 = vsyncpa [#allocation3], 1 }
  0x60   :  { %336 = vsyncpa [#allocation6], 1 }
  0x61   :  { %337 = vsyncpa [#allocation4], 1 }

</bundles_post_ra>
